<compile_context>
chip_gen: v7x
topology: tpu7x:2x2x1
jax: 0.10.0
libtpu: 0.0.40
codegen_flags: <defaults>
</compile_context>

<pallas_src>
import jax
import jax.numpy as jnp
from jax.experimental import pallas as pl
from jax.experimental.pallas import tpu as pltpu


# ---------------------------------------------------------------------------
# Kernels
# ---------------------------------------------------------------------------
def _uai_dense_kernel(e1_ref, e2_ref, w_ref, b_ref, o1_ref, o2_ref):
    """D % 128 == 0 path.

    w_ref: (2, D, D) with w_ref[0] = W2^T, w_ref[1] = W1^T  ((in, out) layout)
    b_ref: (2, 1, D) f32 with b_ref[0] = b2, b_ref[1] = b1
    o1 = tanh(e2 @ W2^T + b2);  o2 = tanh(e1 @ W1^T + b1)
    Both stores are lane-aligned (D multiple of 128) and unmasked.
    """
    wdt = w_ref.dtype
    y1 = jnp.dot(e2_ref[...].astype(wdt), w_ref[0],
                 preferred_element_type=jnp.float32)
    y2 = jnp.dot(e1_ref[...].astype(wdt), w_ref[1],
                 preferred_element_type=jnp.float32)
    # Bias add + tanh kept in f32 (v5e has no bf16 VPU/EUP path); cast once.
    o1_ref[...] = jnp.tanh(y1 + b_ref[0]).astype(o1_ref.dtype)
    o2_ref[...] = jnp.tanh(y2 + b_ref[1]).astype(o2_ref.dtype)


def _uai_fused_kernel(e1_ref, e2_ref, w_ref, b_ref, o_ref):
    """Small / non-lane-aligned D path (e.g. the module default D=64).

    o = tanh(concat([e2, e1], -1) @ W_blockdiag + [b2, b1])  -> (tm, 2D)
    The fused (tm, 2D) slab keeps the output store lane-dense when D < 128.
    """
    x = jnp.concatenate([e2_ref[...], e1_ref[...]], axis=-1).astype(w_ref.dtype)
    y = jnp.dot(x, w_ref[...], preferred_element_type=jnp.float32)
    o_ref[...] = jnp.tanh(y + b_ref[...]).astype(o_ref.dtype)


# ---------------------------------------------------------------------------
# One-time parameter preparation (PyTorch layout -> kernel layout)
# ---------------------------------------------------------------------------
def prepare_params(w1, b1, w2, b2, *, weight_dtype=jnp.bfloat16):
    """Convert nn.Linear params (out_features, in_features) to kernel layout.

    Returns a tagged tuple:
      ("dense", w_stack(2,D,D), b_stack(2,1,D))   when D % 128 == 0
      ("blockdiag", w_bd(2D,2D), b_cat(1,2D))     otherwise
    Weights default to bf16 (halves DMA / VMEM); bias stays f32.
    """
    D = w1.shape[0]
    wdt = jnp.dtype(weight_dtype)
    if D % 128 == 0:
        # Dense stacked (in, out) weights: slot 0 drives output 1 (e2 path).
        w_stack = jnp.stack([w2.T, w1.T]).astype(wdt)                 # (2, D, D)
        b_stack = jnp.stack([b2, b1]).reshape(2, 1, D).astype(jnp.float32)
        return ("dense", w_stack, b_stack)
    # Block-diagonal layout so concat([e2, e1]) @ w_bd + b_cat fuses both GEMMs.
    w_bd = jnp.zeros((2 * D, 2 * D), dtype=wdt)
    w_bd = w_bd.at[:D, :D].set(w2.T.astype(wdt))
    w_bd = w_bd.at[D:, D:].set(w1.T.astype(wdt))
    b_cat = jnp.concatenate([b2, b1]).reshape(1, 2 * D).astype(jnp.float32)
    return ("blockdiag", w_bd, b_cat)


# ---------------------------------------------------------------------------
# Tile / VMEM planning
# ---------------------------------------------------------------------------
def _round_up(x, m):
    return ((x + m - 1) // m) * m


def _vmem_capacity_bytes():
    try:
        return int(pltpu.get_tpu_info().vmem_capacity_bytes)
    except Exception:
        return 64 * 1024 * 1024  # conservative fallback: v7x per-TC VMEM


def _plan(B, D, resident_bytes, act_itemsize, out_itemsize):
    """Pick row tile tm, grid and vmem_limit_bytes from the real footprint."""
    cap = _vmem_capacity_bytes()
    # <= ~56 MiB on v7x (0.85 * 64 MiB), <= 100 MiB on v5e/v6e (128 MiB VMEM).
    cap_limit = min(int(0.85 * cap), 100 * 1024 * 1024)

    if resident_bytes > cap_limit // 2:
        # TODO(synk): K/N-tiled accumulator path for very large latent_dim.
        raise NotImplementedError(
            "latent_dim too large for the whole-weight-resident kernel on this "
            "chip; a K/N-tiled accumulator path is required.")

    # Per-row streaming bytes: 2 input tiles (double-buffered) + 2*D output
    # columns (double-buffered), for either path.
    per_row = 2 * 2 * D * act_itemsize + 2 * (2 * D) * out_itemsize
    budget = max(int(0.6 * cap) - resident_bytes, 2 * 1024 * 1024)
    tm_cap = max(8, min(budget // per_row, 4096))
    tm_cap = (tm_cap // 8) * 8

    if B <= tm_cap:
        tm = B
        # Give the "parallel" batch axis >= 2 grid steps when there is enough
        # work, so both v7x TensorCores are used (harmless on v5e/v6e).
        if B > 256:
            tm = _round_up(pl.cdiv(B, 2), 8)
    else:
        tm = tm_cap

    grid = (pl.cdiv(B, tm),)
    footprint = resident_bytes + tm * per_row
    vmem_limit = int(min(cap_limit, max(32 * 1024 * 1024, int(footprint * 1.25))))
    return tm, grid, vmem_limit


# ---------------------------------------------------------------------------
# Forward wrapper
# ---------------------------------------------------------------------------
def uai_disentangler_forward(e1, e2, params):
    """e1, e2: (B, D). params: output of prepare_params.
    Returns (tanh(e2 @ W2^T + b2), tanh(e1 @ W1^T + b1))."""
    B, D = e1.shape
    assert e2.shape == (B, D)
    kind = params[0]
    act_isz = jnp.dtype(e1.dtype).itemsize
    out_isz = act_isz  # outputs keep the input dtype

    if kind == "dense":
        _, w_stack, b_stack = params
        assert w_stack.shape == (2, D, D) and b_stack.shape == (2, 1, D)
        resident = (w_stack.size * jnp.dtype(w_stack.dtype).itemsize
                    + b_stack.size * 4)
        tm, grid, vmem_limit = _plan(B, D, resident, act_isz, out_isz)

        o1, o2 = pl.pallas_call(
            _uai_dense_kernel,
            out_shape=(jax.ShapeDtypeStruct((B, D), e1.dtype),
                       jax.ShapeDtypeStruct((B, D), e1.dtype)),
            grid=grid,
            in_specs=[
                pl.BlockSpec((tm, D), lambda i: (i, 0)),        # e1 rows
                pl.BlockSpec((tm, D), lambda i: (i, 0)),        # e2 rows
                pl.BlockSpec((2, D, D), lambda i: (0, 0, 0),    # resident weights
                             pipeline_mode=pl.Buffered(1)),
                pl.BlockSpec((2, 1, D), lambda i: (0, 0, 0),    # resident biases
                             pipeline_mode=pl.Buffered(1)),
            ],
            out_specs=(pl.BlockSpec((tm, D), lambda i: (i, 0)),
                       pl.BlockSpec((tm, D), lambda i: (i, 0))),
            compiler_params=pltpu.CompilerParams(
                dimension_semantics=("parallel",),
                vmem_limit_bytes=vmem_limit),
        )(e1, e2, w_stack, b_stack)
        return o1, o2

    # --- blockdiag path (D < 128 or not lane-aligned) ---
    _, w_bd, b_cat = params
    assert w_bd.shape == (2 * D, 2 * D) and b_cat.shape == (1, 2 * D)
    resident = (w_bd.size * jnp.dtype(w_bd.dtype).itemsize + b_cat.size * 4)
    tm, grid, vmem_limit = _plan(B, D, resident, act_isz, out_isz)

    o = pl.pallas_call(
        _uai_fused_kernel,
        out_shape=jax.ShapeDtypeStruct((B, 2 * D), e1.dtype),
        grid=grid,
        in_specs=[
            pl.BlockSpec((tm, D), lambda i: (i, 0)),            # e1 rows
            pl.BlockSpec((tm, D), lambda i: (i, 0)),            # e2 rows
            pl.BlockSpec((2 * D, 2 * D), lambda i: (0, 0),      # block-diag weights
                         pipeline_mode=pl.Buffered(1)),
            pl.BlockSpec((1, 2 * D), lambda i: (0, 0),          # fused bias
                         pipeline_mode=pl.Buffered(1)),
        ],
        out_specs=pl.BlockSpec((tm, 2 * D), lambda i: (i, 0)),  # lane-dense slab
        compiler_params=pltpu.CompilerParams(
            dimension_semantics=("parallel",),
            vmem_limit_bytes=vmem_limit),
    )(e1, e2, w_bd, b_cat)

    # TODO(synk): downstream should consume the fused (B, 2D) slab directly;
    # this split costs one extra output round-trip at large B.
    return o[:, :D], o[:, D:]


def init_params(key, latent_dim):
    """Deterministic init mimicking nn.Linear's uniform(-1/sqrt(in), 1/sqrt(in))."""
    k1, k2, k3, k4 = jax.random.split(key, 4)
    bound = 1.0 / jnp.sqrt(latent_dim)
    w1 = jax.random.uniform(k1, (latent_dim, latent_dim), jnp.float32, -bound, bound)
    b1 = jax.random.uniform(k2, (latent_dim,), jnp.float32, -bound, bound)
    w2 = jax.random.uniform(k3, (latent_dim, latent_dim), jnp.float32, -bound, bound)
    b2 = jax.random.uniform(k4, (latent_dim,), jnp.float32, -bound, bound)
    return w1, b1, w2, b2


if __name__ == "__main__":
    # ---- Test 1: module default D=64 (block-diag fused path), f32 weights ----
    latent_dim, batch = 64, 8
    k_e1, k_e2, k_p = jax.random.split(jax.random.PRNGKey(0), 3)
    e1 = jax.random.normal(k_e1, (batch, latent_dim), jnp.float32)
    e2 = jax.random.normal(k_e2, (batch, latent_dim), jnp.float32)
    w1, b1, w2, b2 = init_params(k_p, latent_dim)

    params_f32 = prepare_params(w1, b1, w2, b2, weight_dtype=jnp.float32)
    o1, o2 = uai_disentangler_forward(e1, e2, params_f32)
    jax.block_until_ready((o1, o2))

    ref1 = jnp.tanh(e2 @ w2.T + b2)
    ref2 = jnp.tanh(e1 @ w1.T + b1)
    assert jnp.allclose(o1, ref1, atol=1e-5), "o1 mismatch (blockdiag/f32 path)"
    assert jnp.allclose(o2, ref2, atol=1e-5), "o2 mismatch (blockdiag/f32 path)"

    # ---- Test 2: lane-aligned D=128 (dense two-dot path), bf16 weights -------
    latent_dim, batch = 128, 64
    k_e1, k_e2, k_p = jax.random.split(jax.random.PRNGKey(1), 3)
    e1 = jax.random.normal(k_e1, (batch, latent_dim), jnp.float32)
    e2 = jax.random.normal(k_e2, (batch, latent_dim), jnp.float32)
    w1, b1, w2, b2 = init_params(k_p, latent_dim)

    params_bf16 = prepare_params(w1, b1, w2, b2)  # bf16 default
    o1, o2 = uai_disentangler_forward(e1, e2, params_bf16)
    jax.block_until_ready((o1, o2))

    ref1 = jnp.tanh(e2 @ w2.T + b2)
    ref2 = jnp.tanh(e1 @ w1.T + b1)
    # bf16 weights/activations on the MXU: widen the tolerance.
    assert jnp.allclose(o1, ref1, atol=3e-2), "o1 mismatch (dense/bf16 path)"
    assert jnp.allclose(o2, ref2, atol=3e-2), "o2 mismatch (dense/bf16 path)"

    print("KERNEL_OK")
</pallas_src>

<mosaic_0001>
module attributes {stable_mosaic.version = 11 : i64} {
  func.func @_uai_fused_kernel(%arg0: i32, %arg1: memref<8x64xf32, #tpu.memory_space<vmem>>, %arg2: memref<8x64xf32, #tpu.memory_space<vmem>>, %arg3: memref<128x128xf32, #tpu.memory_space<vmem>>, %arg4: memref<1x128xf32, #tpu.memory_space<vmem>>, %arg5: memref<8x128xf32, #tpu.memory_space<vmem>>) attributes {dimension_semantics = [#tpu.dimension_semantics<parallel>], iteration_bounds = array<i64: 1>, scalar_prefetch = 0 : i64, scratch_operands = 0 : i64, tpu.core_type = #tpu.core_type<tc>, window_params = [{transform_indices = @transform_0, window_bounds = array<i64: 8, 64>}, {transform_indices = @transform_1, window_bounds = array<i64: 8, 64>}, {pipeline_mode = #tpu.pipeline_mode<synchronous>, transform_indices = @transform_2, window_bounds = array<i64: 128, 128>}, {pipeline_mode = #tpu.pipeline_mode<synchronous>, transform_indices = @transform_3, window_bounds = array<i64: 1, 128>}, {transform_indices = @transform_4, window_bounds = array<i64: 8, 128>}]} {
    %c0 = arith.constant 0 : index
    %c0_0 = arith.constant 0 : index
    %0 = vector.load %arg2[%c0, %c0_0] : memref<8x64xf32, #tpu.memory_space<vmem>>, vector<8x64xf32>
    %c0_1 = arith.constant 0 : index
    %c0_2 = arith.constant 0 : index
    %1 = vector.load %arg1[%c0_1, %c0_2] : memref<8x64xf32, #tpu.memory_space<vmem>>, vector<8x64xf32>
    %2 = tpu.concatenate %0, %1 in 1 : vector<8x64xf32>, vector<8x64xf32> -> vector<8x128xf32>
    %c0_3 = arith.constant 0 : index
    %c0_4 = arith.constant 0 : index
    %3 = vector.load %arg3[%c0_3, %c0_4] : memref<128x128xf32, #tpu.memory_space<vmem>>, vector<128x128xf32>
    %cst = arith.constant dense<0.000000e+00> : vector<8x128xf32>
    %4 = tpu.matmul %2, %3, %cst {dimension_numbers = #tpu.dot_dimension_numbers<[1], [0], [0], [1], [0, 0, 1, 1], [], []>} : vector<8x128xf32>, vector<128x128xf32>, vector<8x128xf32> -> vector<8x128xf32>
    %c0_5 = arith.constant 0 : index
    %c0_6 = arith.constant 0 : index
    %5 = vector.load %arg4[%c0_5, %c0_6] : memref<1x128xf32, #tpu.memory_space<vmem>>, vector<1x128xf32>
    %6 = vector.broadcast %5 : vector<1x128xf32> to vector<8x128xf32>
    %7 = arith.addf %4, %6 : vector<8x128xf32>
    %8 = math.tanh %7 : vector<8x128xf32>
    %c0_7 = arith.constant 0 : index
    %c0_8 = arith.constant 0 : index
    %9 = vector.load %arg5[%c0_7, %c0_8] : memref<8x128xf32, #tpu.memory_space<vmem>>, vector<8x128xf32>
    tpu.vector_store %arg5[%c0_7, %c0_8], %8 {strides = array<i32>} : memref<8x128xf32, #tpu.memory_space<vmem>>, vector<8x128xf32>,
    return
  }
  func.func @transform_0(%arg0: i32) -> (i32, i32) {
    %c0_i32 = arith.constant 0 : i32
    %c0_i32_0 = arith.constant 0 : i32
    return %arg0, %c0_i32 : i32, i32
  }
  func.func @transform_1(%arg0: i32) -> (i32, i32) {
    %c0_i32 = arith.constant 0 : i32
    %c0_i32_0 = arith.constant 0 : i32
    return %arg0, %c0_i32 : i32, i32
  }
  func.func @transform_2(%arg0: i32) -> (i32, i32) {
    %c0_i32 = arith.constant 0 : i32
    %c0_i32_0 = arith.constant 0 : i32
    %c0_i32_1 = arith.constant 0 : i32
    return %c0_i32, %c0_i32_0 : i32, i32
  }
  func.func @transform_3(%arg0: i32) -> (i32, i32) {
    %c0_i32 = arith.constant 0 : i32
    %c0_i32_0 = arith.constant 0 : i32
    %c0_i32_1 = arith.constant 0 : i32
    return %c0_i32, %c0_i32_0 : i32, i32
  }
  func.func @transform_4(%arg0: i32) -> (i32, i32) {
    %c0_i32 = arith.constant 0 : i32
    %c0_i32_0 = arith.constant 0 : i32
    return %arg0, %c0_i32 : i32, i32
  }
}

</mosaic_0001>

<bundles_post_ra>
// kernel: tpu_custom_call.1
= control target key start
LH: loop header
LB: loop body
LE: loop exit
PB: predicated region body
PF: predicated region fallthrough
CT: control target
= control target key end

     0   :  { %9 = vsyncpa [#allocation3], 0  ;;  %s443_s0 = inlined_call_operand.hbm [shape: f32[8,64], index: 0, kind: input, shape index: {}]   ;;  %s444_s1 = inlined_call_operand.hbm [shape: f32[8,64], index: 1, kind: input, shape index: {}]   ;;  %s445_s2 = inlined_call_operand.hbm [shape: f32[128,128], index: 2, kind: input, shape index: {}]   ;;  %s446_s3 = inlined_call_operand.vmem [shape: f32[1,128], index: 3, kind: input, shape index: {}]   ;;  %s447_s4 = inlined_call_operand.hbm [shape: f32[8,128], index: 4, kind: output, shape index: {}]  }
   0x1   :  { %10 = vsyncpa [#allocation6], 0 }
   0x2   :  { %11 = vsyncpa [#allocation4], 0  ;;  %s357_s15 = smov [#allocation5]   ;;  %s358_s17 = smov [#allocation2]  }
   0x3   :  { %s28_s16 = sshll.u32 %s357_s15, 4  ;;  %s18_s18 = sshll.u32 %s358_s17, 4  ;;  %s29_s16 = int_to_ptr.vmem [resolvable:$true] %s28_s16  ;;  %s19_s18 = int_to_ptr.vmem [resolvable:$true] %s18_s18 }
   0x4   :  { %s263_s21 = scalar_lea.hbm %s444_s1, 128 }
   0x5   :  { %p264_p0 = scmp.ne.s32.totalorder %s444_s1, %s263_s21  ;;  %p267_p1 = scmp.lt.u32.totalorder %s263_s21, %s444_s1 }
   0x7   :  { %p269_p2 = pnand %p267_p1, %p264_p0 }
   0x9   :  { %272 = shalt.err (!%p269_p2)
}
   0xa   :  { %s273_s26 = scalar_lea.vmem %s29_s16, 128  ;;  %p278_p4 = scmp.lt.s32.totalorder %s29_s16, %s29_s16 }
   0xb   :  { %p274_p3 = scmp.ne.s32.totalorder %s29_s16, %s273_s26  ;;  %p279_p5 = scmp.lt.s32.totalorder %s273_s26, %s273_s26 }
   0xd   :  { %p280_p6 = por %p279_p5, %p278_p4 }
   0xf   :  { %p281_p7 = pnand %p280_p6, %p274_p3 }
  0x11   :  { %284 = shalt.err (!%p281_p7)
}
  0x12   :  { %31 = dma.hbm_to_vmem [thread:$0]  %s444_s1, 128, %s29_s16, [#allocation6]  }
  0x13   :  { %s285_s5 = scalar_lea.hbm %s443_s0, 128 }
  0x14   :  { %p286_p8 = scmp.ne.s32.totalorder %s443_s0, %s285_s5  ;;  %p289_p9 = scmp.lt.u32.totalorder %s285_s5, %s443_s0 }
  0x16   :  { %p291_p10 = pnand %p289_p9, %p286_p8 }
  0x18   :  { %294 = shalt.err (!%p291_p10)
}
  0x19   :  { %s295_s10 = scalar_lea.vmem %s19_s18, 128  ;;  %p300_p12 = scmp.lt.s32.totalorder %s19_s18, %s19_s18 }
  0x1a   :  { %p296_p11 = scmp.ne.s32.totalorder %s19_s18, %s295_s10  ;;  %p301_p13 = scmp.lt.s32.totalorder %s295_s10, %s295_s10 }
  0x1c   :  { %p302_p0 = por %p301_p13, %p300_p12 }
  0x1e   :  { %p303_p1 = pnand %p302_p0, %p296_p11 }
  0x20   :  { %306 = shalt.err (!%p303_p1)
}
  0x21   :  { %21 = dma.hbm_to_vmem [thread:$0]  %s443_s0, 128, %s19_s18, [#allocation3]  }
  0x22   :  { %s359_s12 = smov [#allocation7]   ;;  %s307_s16 = scalar_lea.hbm %s445_s2, 2048 }
  0x23   :  { %s37_s13 = sshll.u32 %s359_s12, 4  ;;  %p308_p2 = scmp.ne.s32.totalorder %s445_s2, %s307_s16  ;;  %s38_s13 = int_to_ptr.vmem [resolvable:$true] %s37_s13 }
  0x24   :  { %p311_p3 = scmp.lt.u32.totalorder %s307_s16, %s445_s2 }
  0x26   :  { %p313_p4 = pnand %p311_p3, %p308_p2 }
  0x28   :  { %316 = shalt.err (!%p313_p4)
}
  0x29   :  { %s317_s22 = scalar_lea.vmem %s38_s13, 2048  ;;  %p322_p6 = scmp.lt.s32.totalorder %s38_s13, %s38_s13 }
  0x2a   :  { %p318_p5 = scmp.ne.s32.totalorder %s38_s13, %s317_s22  ;;  %p323_p7 = scmp.lt.s32.totalorder %s317_s22, %s317_s22 }
  0x2c   :  { %p324_p8 = por %p323_p7, %p322_p6 }
  0x2e   :  { %p325_p9 = pnand %p324_p8, %p318_p5 }
  0x30   :  { %328 = shalt.err (!%p325_p9)
}
  0x31   :  { %s360_s0 = smov 128   ;;  %s361_s18 = smov 8  }
  0x32   :  { %43 = dma.hbm_to_vmem [thread:$0]  %s445_s2, 2048, %s38_s13, [#allocation6], %s360_s0, %s360_s0, %s361_s18  }
  0x33   :  { %351 = dma.done.wait [#allocation3], 128  }
  0x34   :  { %352 = vsyncadd [#allocation3], 4294967168 }
  0x35   :  { %353 = dma.done.wait [#allocation6], 2176  }
  0x36   :  { %354 = vsyncadd [#allocation6], 4294965120  ;;  %v362_v0 = vmov 0.0|0.0   ;;  %vm363_vm0 = vmmov 0   ;;  %v364_v1 = vmov 0.0   ;;  %v56_v2 = vld [vmem:[#allocation2] sm:$0xff] }
  0x37   :  { %227 = vmatprep.subr.bf16.mxu0 %v362_v0  ;;  %224 = vmatprep.mubr.msk.f32.mxu0 %vm363_vm0, %v364_v1  ;;  %v63_v3 = vld [vmem:[#allocation7] sm:$0xff]  ;;  %v64_v4 = vld [vmem:[#allocation7 + $0x8] sm:$0xff]  ;;  %s365_s25 = smov 64   ;;  %v65_v6 = vld [vmem:[#allocation7 + $0x10] sm:$0xff]  ;;  %vm61_vm1 = vcmask 523264   ;;  %s366_s27 = smov [#allocation8]  }
  0x38   :  { %58 = vrot.lane.b32.xlu0 %v56_v2, %s365_s25  ;;  %v228_v5 = vpack.c.bf16 %v64_v4, %v63_v3  ;;  %v66_v7 = vld [vmem:[#allocation7 + $0x18] sm:$0xff]  ;;  %v67_v9 = vld [vmem:[#allocation7 + $0x20] sm:$0xff]  ;;  %v68_v10 = vld [vmem:[#allocation7 + $0x28] sm:$0xff]  ;;  %s164_s28 = sshll.u32 %s366_s27, 4  ;;  %s165_s28 = int_to_ptr.vmem [resolvable:$true] %s164_s28 }
  0x39   :  { %v231_v8 = vpack.c.bf16 %v66_v7, %v65_v6  ;;  %v234_v11 = vpack.c.bf16 %v68_v10, %v67_v9  ;;  %v69_v12 = vld [vmem:[#allocation7 + $0x30] sm:$0xff]  ;;  %v70_v13 = vld [vmem:[#allocation7 + $0x38] sm:$0xff]  ;;  %v71_v15 = vld [vmem:[#allocation7 + $0x40] sm:$0xff]  ;;  %s329_s29 = scalar_lea.vmem %s165_s28, 128  ;;  %p334_p11 = scmp.lt.s32.totalorder %s165_s28, %s165_s28 }
  0x3a   :  { %229 = vmatpush3.bf16.msra.mxu0 %v228_v5  ;;  %v237_v14 = vpack.c.bf16 %v70_v13, %v69_v12  ;;  %v72_v16 = vld [vmem:[#allocation7 + $0x48] sm:$0xff]  ;;  %v73_v18 = vld [vmem:[#allocation7 + $0x50] sm:$0xff]  ;;  %v74_v19 = vld [vmem:[#allocation7 + $0x58] sm:$0xff]  ;;  %p330_p10 = scmp.ne.s32.totalorder %s165_s28, %s329_s29  ;;  %p335_p12 = scmp.lt.s32.totalorder %s329_s29, %s329_s29 }
  0x3b   :  { %230 = vmatprep.subr.bf16.mxu0 %v362_v0  ;;  %v240_v17 = vpack.c.bf16 %v72_v16, %v71_v15  ;;  %v243_v20 = vpack.c.bf16 %v74_v19, %v73_v18  ;;  %v75_v21 = vld [vmem:[#allocation7 + $0x60] sm:$0xff]  ;;  %v76_v22 = vld [vmem:[#allocation7 + $0x68] sm:$0xff]  ;;  %v77_v24 = vld [vmem:[#allocation7 + $0x70] sm:$0xff] }
  0x3c   :  { %v246_v23 = vpack.c.bf16 %v76_v22, %v75_v21  ;;  %v78_v25 = vld [vmem:[#allocation7 + $0x78] sm:$0xff]  ;;  %v174_v30 = vld [vmem:[%s446_s3] ss:$0 sm:$0xff]  ;;  %p336_p13 = por %p335_p12, %p334_p11 }
  0x3d   :  { %v249_v26 = vpack.c.bf16 %v78_v25, %v77_v24  ;;  %v55_v27 = vld [vmem:[#allocation5] sm:$0xff] }
  0x3e   :  { %232 = vmatpush3.bf16.msra.mxu0 %v231_v8  ;;  %p337_p0 = pnand %p336_p13, %p330_p10 }
  0x3f   :  { %233 = vmatprep.subr.bf16.mxu0 %v362_v0 }
  0x42   :  { %235 = vmatpush3.bf16.msra.mxu0 %v234_v11 }
  0x43   :  { %236 = vmatprep.subr.bf16.mxu0 %v362_v0 }
  0x46   :  { %238 = vmatpush3.bf16.msra.mxu0 %v237_v14 }
  0x47   :  { %239 = vmatprep.subr.bf16.mxu0 %v362_v0 }
  0x4a   :  { %241 = vmatpush3.bf16.msra.mxu0 %v240_v17 }
  0x4b   :  { %242 = vmatprep.subr.bf16.mxu0 %v362_v0 }
  0x4e   :  { %244 = vmatpush3.bf16.msra.mxu0 %v243_v20 }
  0x4f   :  { %245 = vmatprep.subr.bf16.mxu0 %v362_v0 }
  0x52   :  { %247 = vmatpush3.bf16.msra.mxu0 %v246_v23 }
  0x53   :  { %248 = vmatprep.subr.bf16.mxu0 %v362_v0 }
  0x56   :  { %250 = vmatpush3.bf16.msra.mxu0 %v249_v26 }
  0xaa   :  { %v59_v28 = vpop.permute.xlu0 %58 }
  0xab   :  { %v62_v29 = vsel %vm61_vm1, %v55_v27, %v59_v28 }
  0xac   :  { %225 = vmatmul.mubr.f32.vlgmr.msra.gmra.mrb[0].mxu0 %v62_v29 }
 0x17f   :  { %v152_v31 = vpop.f32.mrb[0].mxu0 }
 0x180   :  { %v153_v32 = vadd.f32 %v174_v30, %v152_v31  ;;  %v226_v33 = vpop.f32.mrb[1].mxu0 }
 0x182   :  { %261 = vtanh.f32 %v153_v32 }
 0x18c   :  { %v262_v34 = vpop.eup %261 }
 0x18d   :  { %157 = vst [vmem:[#allocation8] sm:$0xff] %v262_v34 }
 0x18e   :  { %340 = shalt.err (!%p337_p0)
}
 0x18f   :  { %s341_s3 = scalar_lea.hbm %s447_s4, 128 }
 0x190   :  { %p342_p1 = scmp.ne.s32.totalorder %s447_s4, %s341_s3  ;;  %p345_p2 = scmp.lt.u32.totalorder %s341_s3, %s447_s4 }
 0x192   :  { %p347_p3 = pnand %p345_p2, %p342_p1 }
 0x194   :  { %350 = shalt.err (!%p347_p3)
}
 0x195   :  { %167 = dma.vmem_to_hbm [thread:$0]  %s165_s28, 128, %s447_s4, [#allocation4]  }
 0x196   :  { %355 = dma.done.wait [#allocation4], 128  }
 0x197   :  { %356 = vsyncadd [#allocation4], 4294967168 }
 0x198   :  { %171 = vsyncpa [#allocation3], 1 }
 0x199   :  { %172 = vsyncpa [#allocation6], 1 }
 0x19a   :  { %173 = vsyncpa [#allocation4], 1 }

</bundles_post_ra>
